<compile_context>
chip_gen: v6e
topology: v6e:2x2x1
jax: 0.10.0
libtpu: 0.0.40
codegen_flags: <defaults>
</compile_context>

<pallas_src>
import functools
import math

import jax
import jax.numpy as jnp
from jax.experimental import pallas as pl
from jax.experimental.pallas import tpu as pltpu

LANE = 128
SUB = 8
_NEG_INF = -1e30   # large-negative mask fill (avoids NaN on fully-masked rows)


def _round_up(n, m):
    return (n + m - 1) // m * m


def _pick_tile(total, cap):
    """Largest 128-multiple tile <= cap that divides `total` (a 128-multiple)."""
    if total <= cap:
        return total
    t = cap - cap % LANE
    while total % t:
        t -= LANE
    return t


def _vmem_limit(block_bytes):
    # ~2x headroom over the raw pipelined block bytes; floor at 32 MiB (>= the
    # default scoped limit everywhere), cap at v7x's 64 MiB physical VMEM.
    return int(min(max(2 * block_bytes, 32 * 1024 * 1024), 64 * 1024 * 1024))


# --------------------------------------------------------------------------- #
# Kernels
# --------------------------------------------------------------------------- #
def _kv_proj_kernel(enc_ref, wkv_ref, bkv_ref, kv_ref):
    """kv = enc @ [Wk | Wv] + [bk | bv]  (bf16 MXU operands, f32 accumulate)."""
    kv = jnp.dot(enc_ref[0], wkv_ref[...],
                 preferred_element_type=jnp.float32) + bkv_ref[...]
    kv_ref[0] = kv.astype(kv_ref.dtype)


def _attn_kernel(x_ref, kv_ref, mask_ref, wq_ref, bq_ref, x2_ref,
                 q_sc, m_sc, l_sc, acc_sc, *, d_pad):
    """Flash attention over key tiles + residual: x2 = x + softmax(q k^T) v."""
    kvi = pl.program_id(1)

    @pl.when(kvi == 0)
    def _init():
        # q projection once per query tile (1/sqrt(D) pre-folded into Wq/bq).
        q = jnp.dot(x_ref[0].astype(jnp.bfloat16), wq_ref[...],
                    preferred_element_type=jnp.float32) + bq_ref[...]
        q_sc[...] = q.astype(jnp.bfloat16)
        m_sc[...] = jnp.full_like(m_sc, -jnp.inf)
        l_sc[...] = jnp.zeros_like(l_sc)
        acc_sc[...] = jnp.zeros_like(acc_sc)

    kv = kv_ref[0]                       # (TKV, 2*D_pad) bf16
    k = kv[:, :d_pad]
    v = kv[:, d_pad:]

    # Scores: contract the feature dim directly (no k transpose / XLU copy).
    s = jax.lax.dot_general(q_sc[...], k, (((1,), (1,)), ((), ())),
                            preferred_element_type=jnp.float32)      # (TM, TKV)
    s = jnp.where(mask_ref[0] != 0, s, _NEG_INF)

    m_prev = m_sc[...]
    m_new = jnp.maximum(m_prev, s.max(axis=-1, keepdims=True))
    alpha = jnp.exp(m_prev - m_new)
    p = jnp.exp(s - m_new)
    l_sc[...] = alpha * l_sc[...] + p.sum(axis=-1, keepdims=True)
    acc_sc[...] = alpha * acc_sc[...] + jnp.dot(
        p.astype(jnp.bfloat16), v, preferred_element_type=jnp.float32)
    m_sc[...] = m_new

    @pl.when(kvi == pl.num_programs(1) - 1)
    def _finalize():
        # Normalize AFTER the PV matmul (per review): scales (TM, D) not (TM, Se).
        attn = acc_sc[...] * pl.reciprocal(l_sc[...], approx=True)
        x2_ref[0] = (x_ref[0] + attn).astype(x2_ref.dtype)


def _out_proj_kernel(x2_ref, wo_ref, bo_ref, out_ref):
    """logits tile = x2 @ Wo[:, vtile] + bo[vtile]."""
    out_ref[...] = (jnp.dot(x2_ref[...], wo_ref[...],
                            preferred_element_type=jnp.float32)
                    + bo_ref[...]).astype(out_ref.dtype)


# --------------------------------------------------------------------------- #
# One-time parameter preprocessing (hoisted out of the forward path)
# --------------------------------------------------------------------------- #
def prepare_params(params):
    embed, wq, bq, wk, bk, wv, bv, wo, bo = params
    D = wq.shape[0]
    V = wo.shape[1]
    D_pad = _round_up(D, LANE)
    V_pad = _round_up(V, LANE)
    scale = 1.0 / math.sqrt(D)

    pad2 = lambda w, r, c: jnp.pad(w, ((0, r - w.shape[0]), (0, c - w.shape[1])))
    padb = lambda b, n: jnp.pad(b, (0, n - b.shape[0])).reshape(1, n).astype(jnp.float32)

    return dict(
        D=D, V=V, D_pad=D_pad, V_pad=V_pad,
        # Embedding table pre-padded on the feature dim so the gathered
        # activations are already lane-aligned (no extra pad copy per forward).
        embed=pad2(embed, embed.shape[0], D_pad).astype(jnp.float32),
        wq=(pad2(wq, D_pad, D_pad) * scale).astype(jnp.bfloat16),   # scale folded
        bq=padb(bq, D_pad) * scale,                                 # scale folded
        wkv=jnp.concatenate([pad2(wk, D_pad, D_pad), pad2(wv, D_pad, D_pad)],
                            axis=1).astype(jnp.bfloat16),           # (D_pad, 2*D_pad)
        bkv=jnp.concatenate([padb(bk, D_pad), padb(bv, D_pad)], axis=1),
        wo=pad2(wo, D_pad, V_pad).astype(jnp.bfloat16),
        bo=padb(bo, V_pad),
    )


# --------------------------------------------------------------------------- #
# Forward pass
# --------------------------------------------------------------------------- #
def dummy_model_forward(tokens, encoder_mask, encoder_input, prepared,
                        *, single_buffer_weights=True):
    """tokens [B,S] int32; encoder_input [B,Se,D] f32; encoder_mask [B,S,Se] bool."""
    D, V = prepared["D"], prepared["V"]
    D_pad, V_pad = prepared["D_pad"], prepared["V_pad"]
    B, S = tokens.shape
    Se = encoder_input.shape[1]

    # ---- tile sizes --------------------------------------------------------
    kind = jax.devices()[0].device_kind.lower()
    big_mxu = ("v5 lite" not in kind) and ("v5e" not in kind)   # v6e/v7x: 256x256 MXU
    if S >= 256 and big_mxu:
        TM = 256
    elif S >= 128:
        TM = 128
    else:
        TM = max(32, _round_up(S, SUB))   # >=32 rows: native (32,128) int8 mask tile
    S_pad = _round_up(S, TM)
    n_q = S_pad // TM

    Se_pad = _round_up(Se, LANE)
    TKV = _pick_tile(Se_pad, 512)         # flash key tile
    n_kv = Se_pad // TKV
    TSE = _pick_tile(Se_pad, 512)         # kv-projection row tile
    n_se = Se_pad // TSE
    TV = _pick_tile(V_pad, 2048)          # vocab tile for the output projection
    n_v = V_pad // TV

    nbw = 1 if single_buffer_weights else 2

    def const_spec(shape, imap):
        # Grid-invariant weight/bias blocks: double buffering buys no overlap,
        # so request a single buffer to halve their VMEM footprint.
        if single_buffer_weights:
            return pl.BlockSpec(shape, imap, pipeline_mode=pl.Buffered(1))
        return pl.BlockSpec(shape, imap)

    # ---- glue: embedding gather + padding ----------------------------------
    # TODO(synk): move the gather in-kernel (scalar-prefetched token ids + per-row
    # DMA from an ANY-space embed table) to drop this HBM round trip entirely.
    x = jnp.take(prepared["embed"], tokens, axis=0)               # (B, S, D_pad) f32
    x = jnp.pad(x, ((0, 0), (0, S_pad - S), (0, 0)))
    enc = jnp.pad(encoder_input,
                  ((0, 0), (0, Se_pad - Se), (0, D_pad - D))).astype(jnp.bfloat16)
    mask = jnp.pad(encoder_mask.astype(jnp.int8),
                   ((0, 0), (0, S_pad - S), (0, Se_pad - Se)))     # 1 = attend

    # ---- 1) K/V projection: once per batch (NOT per query tile) ------------
    kvproj_bytes = (2 * TSE * D_pad * 2 + 2 * TSE * 2 * D_pad * 2
                    + nbw * (D_pad * 2 * D_pad * 2 + 2 * D_pad * 4))
    kv = pl.pallas_call(
        _kv_proj_kernel,
        out_shape=jax.ShapeDtypeStruct((B, Se_pad, 2 * D_pad), jnp.bfloat16),
        grid_spec=pltpu.PrefetchScalarGridSpec(
            num_scalar_prefetch=0,
            grid=(B, n_se),
            in_specs=[
                pl.BlockSpec((1, TSE, D_pad), lambda b, si: (b, si, 0)),
                const_spec((D_pad, 2 * D_pad), lambda b, si: (0, 0)),
                const_spec((1, 2 * D_pad), lambda b, si: (0, 0)),
            ],
            out_specs=pl.BlockSpec((1, TSE, 2 * D_pad), lambda b, si: (b, si, 0)),
        ),
        compiler_params=pltpu.CompilerParams(
            dimension_semantics=("parallel", "parallel"),
            vmem_limit_bytes=_vmem_limit(kvproj_bytes)),
    )(enc, prepared["wkv"], prepared["bkv"])

    # ---- 2) Flash attention + residual --------------------------------------
    # Grid: flattened (B * n_q) query-row axis (parallel) x key-tile axis
    # ("arbitrary": the online-softmax accumulator lives across it).
    attn_bytes = (2 * TM * D_pad * 4 + 2 * TKV * 2 * D_pad * 2 + 2 * TM * TKV
                  + nbw * (D_pad * D_pad * 2 + D_pad * 4) + 2 * TM * D_pad * 2
                  + TM * D_pad * 2 + 2 * TM * LANE * 4 + TM * D_pad * 4)
    x2 = pl.pallas_call(
        functools.partial(_attn_kernel, d_pad=D_pad),
        out_shape=jax.ShapeDtypeStruct((B, S_pad, D_pad), jnp.bfloat16),
        grid_spec=pltpu.PrefetchScalarGridSpec(
            num_scalar_prefetch=0,
            grid=(B * n_q, n_kv),
            in_specs=[
                pl.BlockSpec((1, TM, D_pad),
                             lambda r, kvi: (r // n_q, r % n_q, 0)),      # x (f32)
                pl.BlockSpec((1, TKV, 2 * D_pad),
                             lambda r, kvi: (r // n_q, kvi, 0)),          # k|v (bf16)
                pl.BlockSpec((1, TM, TKV),
                             lambda r, kvi: (r // n_q, r % n_q, kvi)),    # mask (int8)
                const_spec((D_pad, D_pad), lambda r, kvi: (0, 0)),        # Wq (scaled)
                const_spec((1, D_pad), lambda r, kvi: (0, 0)),            # bq (scaled)
            ],
            out_specs=pl.BlockSpec((1, TM, D_pad),
                                   lambda r, kvi: (r // n_q, r % n_q, 0)),
            scratch_shapes=[
                pltpu.VMEM((TM, D_pad), jnp.bfloat16),   # q (computed once per tile)
                pltpu.VMEM((TM, 1), jnp.float32),        # running max m
                pltpu.VMEM((TM, 1), jnp.float32),        # running denom l
                pltpu.VMEM((TM, D_pad), jnp.float32),    # unnormalized accumulator
            ],
        ),
        compiler_params=pltpu.CompilerParams(
            dimension_semantics=("parallel", "arbitrary"),
            vmem_limit_bytes=_vmem_limit(attn_bytes)),
    )(x, kv, mask, prepared["wq"], prepared["bq"])

    # ---- 3) Output projection, vocab-tiled ----------------------------------
    # Grid order (vocab tile outer, rows inner): the large Wo tile stays resident
    # while the cheaper x2 row tiles stream underneath it.
    # TODO(synk): add a D reduction grid axis for very large hidden dims.
    x2_flat = x2.reshape(B * S_pad, D_pad)
    n_m = (B * S_pad) // TM
    outproj_bytes = (2 * TM * D_pad * 2 + 2 * (D_pad * TV * 2 + TV * 4)
                     + 2 * TM * TV * 4)
    out = pl.pallas_call(
        _out_proj_kernel,
        out_shape=jax.ShapeDtypeStruct((B * S_pad, V_pad), jnp.float32),
        grid_spec=pltpu.PrefetchScalarGridSpec(
            num_scalar_prefetch=0,
            grid=(n_v, n_m),
            in_specs=[
                pl.BlockSpec((TM, D_pad), lambda vi, mi: (mi, 0)),
                pl.BlockSpec((D_pad, TV), lambda vi, mi: (0, vi)),
                pl.BlockSpec((1, TV), lambda vi, mi: (0, vi)),
            ],
            out_specs=pl.BlockSpec((TM, TV), lambda vi, mi: (mi, vi)),
        ),
        compiler_params=pltpu.CompilerParams(
            dimension_semantics=("parallel", "parallel"),
            vmem_limit_bytes=_vmem_limit(outproj_bytes)),
    )(x2_flat, prepared["wo"], prepared["bo"])

    return out.reshape(B, S_pad, V_pad)[:, :S, :V]


# --------------------------------------------------------------------------- #
# Reference + test harness
# --------------------------------------------------------------------------- #
def _reference_forward(tokens, encoder_mask, encoder_input, params):
    """Pure-JAX f32 reference mirroring the PyTorch forward."""
    embed_table, wq, bq, wk, bk, wv, bv, wo, bo = params
    x = jnp.take(embed_table, tokens, axis=0)
    q = x @ wq + bq
    k = encoder_input @ wk + bk
    v = encoder_input @ wv + bv
    scale = 1.0 / math.sqrt(q.shape[-1])
    s = jnp.einsum("bqd,bkd->bqk", q, k) * scale
    s = jnp.where(encoder_mask, s, _NEG_INF)
    p = jax.nn.softmax(s, axis=-1)
    x = x + jnp.einsum("bqk,bkd->bqd", p, v)
    return x @ wo + bo


def make_params(key, dim, vocab_size):
    ks = jax.random.split(key, 9)
    bound = 1.0 / math.sqrt(dim)
    embed = jax.random.normal(ks[0], (vocab_size, dim), jnp.float32)
    wq = jax.random.uniform(ks[1], (dim, dim), jnp.float32, -bound, bound)
    bq = jax.random.uniform(ks[2], (dim,), jnp.float32, -bound, bound)
    wk = jax.random.uniform(ks[3], (dim, dim), jnp.float32, -bound, bound)
    bk = jax.random.uniform(ks[4], (dim,), jnp.float32, -bound, bound)
    wv = jax.random.uniform(ks[5], (dim, dim), jnp.float32, -bound, bound)
    bv = jax.random.uniform(ks[6], (dim,), jnp.float32, -bound, bound)
    wo = jax.random.uniform(ks[7], (dim, vocab_size), jnp.float32, -bound, bound)
    bo = jax.random.uniform(ks[8], (vocab_size,), jnp.float32, -bound, bound)
    return (embed, wq, bq, wk, bk, wv, bv, wo, bo)


if __name__ == "__main__":
    B, S, Se, D, V = 2, 8, 8, 32, 128

    key = jax.random.PRNGKey(0)
    k_tok, k_enc, k_mask, k_par = jax.random.split(key, 4)

    tokens = jax.random.randint(k_tok, (B, S), 0, V, dtype=jnp.int32)
    encoder_input = jax.random.normal(k_enc, (B, Se, D), jnp.float32)
    # Random boolean mask; force the diagonal True so every row attends somewhere.
    encoder_mask = jax.random.bernoulli(k_mask, 0.7, (B, S, Se))
    encoder_mask = encoder_mask | jnp.eye(S, Se, dtype=bool)[None]

    params = make_params(k_par, D, V)
    prepared = prepare_params(params)      # one-time weight preprocessing

    try:
        out = jax.block_until_ready(
            dummy_model_forward(tokens, encoder_mask, encoder_input, prepared,
                                single_buffer_weights=True))
    except Exception:
        # pl.Buffered(1) (single-buffered constant weights) is purely a VMEM
        # optimization; fall back to default double-buffering if this JAX build
        # rejects buffer_count=1.
        out = jax.block_until_ready(
            dummy_model_forward(tokens, encoder_mask, encoder_input, prepared,
                                single_buffer_weights=False))

    ref = _reference_forward(tokens, encoder_mask, encoder_input, params)
    assert out.shape == (B, S, V)
    # bf16 MXU operands (f32 accumulation) + approx reciprocal -> compare against
    # the f32 reference at a bf16-appropriate tolerance.
    assert jnp.allclose(out, ref, atol=5e-2, rtol=5e-2), "mismatch vs reference"

    print("KERNEL_OK")
</pallas_src>

<mosaic_0001>
module attributes {stable_mosaic.version = 11 : i64} {
  func.func @_kv_proj_kernel(%arg0: i32, %arg1: i32, %arg2: memref<1x128x128xbf16, #tpu.memory_space<vmem>>, %arg3: memref<128x256xbf16, #tpu.memory_space<vmem>>, %arg4: memref<1x256xf32, #tpu.memory_space<vmem>>, %arg5: memref<1x128x256xbf16, #tpu.memory_space<vmem>>) attributes {dimension_semantics = [#tpu.dimension_semantics<parallel>, #tpu.dimension_semantics<parallel>], iteration_bounds = array<i64: 2, 1>, scalar_prefetch = 0 : i64, scratch_operands = 0 : i64, tpu.core_type = #tpu.core_type<tc>, window_params = [{transform_indices = @transform_0, window_bounds = array<i64: 1, 128, 128>}, {pipeline_mode = #tpu.pipeline_mode<synchronous>, transform_indices = @transform_1, window_bounds = array<i64: 128, 256>}, {pipeline_mode = #tpu.pipeline_mode<synchronous>, transform_indices = @transform_2, window_bounds = array<i64: 1, 256>}, {transform_indices = @transform_3, window_bounds = array<i64: 1, 128, 256>}]} {
    %c0 = arith.constant 0 : index
    %c0_0 = arith.constant 0 : index
    %c0_1 = arith.constant 0 : index
    %0 = vector.load %arg2[%c0, %c0_0, %c0_1] : memref<1x128x128xbf16, #tpu.memory_space<vmem>>, vector<1x128x128xbf16>
    %1 = vector.shape_cast %0 : vector<1x128x128xbf16> to vector<128x128xbf16>
    %c0_2 = arith.constant 0 : index
    %c0_3 = arith.constant 0 : index
    %2 = vector.load %arg3[%c0_2, %c0_3] : memref<128x256xbf16, #tpu.memory_space<vmem>>, vector<128x256xbf16>
    %cst = arith.constant dense<0.000000e+00> : vector<128x256xf32>
    %3 = tpu.matmul %1, %2, %cst {dimension_numbers = #tpu.dot_dimension_numbers<[1], [0], [0], [1], [0, 0, 1, 1], [], []>} : vector<128x128xbf16>, vector<128x256xbf16>, vector<128x256xf32> -> vector<128x256xf32>
    %c0_4 = arith.constant 0 : index
    %c0_5 = arith.constant 0 : index
    %4 = vector.load %arg4[%c0_4, %c0_5] : memref<1x256xf32, #tpu.memory_space<vmem>>, vector<1x256xf32>
    %5 = vector.broadcast %4 : vector<1x256xf32> to vector<128x256xf32>
    %6 = arith.addf %3, %5 : vector<128x256xf32>
    %7 = arith.truncf %6 : vector<128x256xf32> to vector<128x256xbf16>
    %c0_6 = arith.constant 0 : index
    %c0_7 = arith.constant 0 : index
    %c0_8 = arith.constant 0 : index
    %8 = vector.load %arg5[%c0_6, %c0_7, %c0_8] : memref<1x128x256xbf16, #tpu.memory_space<vmem>>, vector<1x128x256xbf16>
    %9 = vector.shape_cast %8 : vector<1x128x256xbf16> to vector<128x256xbf16>
    %10 = vector.shape_cast %7 : vector<128x256xbf16> to vector<1x128x256xbf16>
    tpu.vector_store %arg5[%c0_6, %c0_7, %c0_8], %10 {strides = array<i32>} : memref<1x128x256xbf16, #tpu.memory_space<vmem>>, vector<1x128x256xbf16>,
    return
  }
  func.func @transform_0(%arg0: i32, %arg1: i32) -> (i32, i32, i32) {
    %c0_i32 = arith.constant 0 : i32
    %c0_i32_0 = arith.constant 0 : i32
    return %arg0, %arg1, %c0_i32 : i32, i32, i32
  }
  func.func @transform_1(%arg0: i32, %arg1: i32) -> (i32, i32) {
    %c0_i32 = arith.constant 0 : i32
    %c0_i32_0 = arith.constant 0 : i32
    %c0_i32_1 = arith.constant 0 : i32
    return %c0_i32, %c0_i32_0 : i32, i32
  }
  func.func @transform_2(%arg0: i32, %arg1: i32) -> (i32, i32) {
    %c0_i32 = arith.constant 0 : i32
    %c0_i32_0 = arith.constant 0 : i32
    %c0_i32_1 = arith.constant 0 : i32
    return %c0_i32, %c0_i32_0 : i32, i32
  }
  func.func @transform_3(%arg0: i32, %arg1: i32) -> (i32, i32, i32) {
    %c0_i32 = arith.constant 0 : i32
    %c0_i32_0 = arith.constant 0 : i32
    return %arg0, %arg1, %c0_i32 : i32, i32, i32
  }
}

module attributes {stable_mosaic.version = 11 : i64} {
  func.func @_kv_proj_kernel(%arg0: i32, %arg1: i32, %arg2: memref<1x128x128xbf16, #tpu.memory_space<vmem>>, %arg3: memref<128x256xbf16, #tpu.memory_space<vmem>>, %arg4: memref<1x256xf32, #tpu.memory_space<vmem>>, %arg5: memref<1x128x256xbf16, #tpu.memory_space<vmem>>) attributes {dimension_semantics = [#tpu.dimension_semantics<parallel>, #tpu.dimension_semantics<parallel>], iteration_bounds = array<i64: 2, 1>, scalar_prefetch = 0 : i64, scratch_operands = 0 : i64, tpu.core_type = #tpu.core_type<tc>, window_params = [{transform_indices = @transform_0, window_bounds = array<i64: 1, 128, 128>}, {pipeline_mode = #tpu.pipeline_mode<synchronous>, transform_indices = @transform_1, window_bounds = array<i64: 128, 256>}, {pipeline_mode = #tpu.pipeline_mode<synchronous>, transform_indices = @transform_2, window_bounds = array<i64: 1, 256>}, {transform_indices = @transform_3, window_bounds = array<i64: 1, 128, 256>}]} {
    %c0 = arith.constant 0 : index
    %c0_0 = arith.constant 0 : index
    %c0_1 = arith.constant 0 : index
    %0 = vector.load %arg2[%c0, %c0_0, %c0_1] : memref<1x128x128xbf16, #tpu.memory_space<vmem>>, vector<1x128x128xbf16>
    %1 = vector.shape_cast %0 : vector<1x128x128xbf16> to vector<128x128xbf16>
    %c0_2 = arith.constant 0 : index
    %c0_3 = arith.constant 0 : index
    %2 = vector.load %arg3[%c0_2, %c0_3] : memref<128x256xbf16, #tpu.memory_space<vmem>>, vector<128x256xbf16>
    %cst = arith.constant dense<0.000000e+00> : vector<128x256xf32>
    %3 = tpu.matmul %1, %2, %cst {dimension_numbers = #tpu.dot_dimension_numbers<[1], [0], [0], [1], [0, 0, 1, 1], [], []>} : vector<128x128xbf16>, vector<128x256xbf16>, vector<128x256xf32> -> vector<128x256xf32>
    %c0_4 = arith.constant 0 : index
    %c0_5 = arith.constant 0 : index
    %4 = vector.load %arg4[%c0_4, %c0_5] : memref<1x256xf32, #tpu.memory_space<vmem>>, vector<1x256xf32>
    %5 = vector.broadcast %4 : vector<1x256xf32> to vector<128x256xf32>
    %6 = arith.addf %3, %5 : vector<128x256xf32>
    %7 = arith.truncf %6 : vector<128x256xf32> to vector<128x256xbf16>
    %c0_6 = arith.constant 0 : index
    %c0_7 = arith.constant 0 : index
    %c0_8 = arith.constant 0 : index
    %8 = vector.load %arg5[%c0_6, %c0_7, %c0_8] : memref<1x128x256xbf16, #tpu.memory_space<vmem>>, vector<1x128x256xbf16>
    %9 = vector.shape_cast %8 : vector<1x128x256xbf16> to vector<128x256xbf16>
    %10 = vector.shape_cast %7 : vector<128x256xbf16> to vector<1x128x256xbf16>
    tpu.vector_store %arg5[%c0_6, %c0_7, %c0_8], %10 {strides = array<i32>} : memref<1x128x256xbf16, #tpu.memory_space<vmem>>, vector<1x128x256xbf16>,
    return
  }
  func.func @transform_0(%arg0: i32, %arg1: i32) -> (i32, i32, i32) {
    %c0_i32 = arith.constant 0 : i32
    %c0_i32_0 = arith.constant 0 : i32
    return %arg0, %arg1, %c0_i32 : i32, i32, i32
  }
  func.func @transform_1(%arg0: i32, %arg1: i32) -> (i32, i32) {
    %c0_i32 = arith.constant 0 : i32
    %c0_i32_0 = arith.constant 0 : i32
    %c0_i32_1 = arith.constant 0 : i32
    return %c0_i32, %c0_i32_0 : i32, i32
  }
  func.func @transform_2(%arg0: i32, %arg1: i32) -> (i32, i32) {
    %c0_i32 = arith.constant 0 : i32
    %c0_i32_0 = arith.constant 0 : i32
    %c0_i32_1 = arith.constant 0 : i32
    return %c0_i32, %c0_i32_0 : i32, i32
  }
  func.func @transform_3(%arg0: i32, %arg1: i32) -> (i32, i32, i32) {
    %c0_i32 = arith.constant 0 : i32
    %c0_i32_0 = arith.constant 0 : i32
    return %arg0, %arg1, %c0_i32 : i32, i32, i32
  }
}

</mosaic_0001>

<bundles_post_ra>
// kernel: tpu_custom_call.1
= control target key start
LH: loop header
LB: loop body
LE: loop exit
PB: predicated region body
PF: predicated region fallthrough
CT: control target
= control target key end

     0   :  { %8 = vsyncpa [#allocation3], 0  ;;  %s1367_s0 = inlined_call_operand.hbm [shape: bf16[2,128,128], index: 0, kind: input, shape index: {}]   ;;  %s1368_s1 = inlined_call_operand.hbm [shape: bf16[128,256], index: 1, kind: input, shape index: {}]   ;;  %s1369_s2 = inlined_call_operand.vmem [shape: f32[1,256], index: 2, kind: input, shape index: {}]   ;;  %s1370_s3 = inlined_call_operand.hbm [shape: bf16[2,128,256], index: 3, kind: output, shape index: {}]  }
   0x1   :  { %10 = vsyncpa [#allocation3 + $0x1], 0 }
   0x2   :  { %11 = vsyncpa [#allocation6], 0 }
   0x3   :  { %12 = vsyncpa [#allocation4], 0 }
   0x4   :  { %14 = vsyncpa [#allocation4 + $0x1], 0  ;;  %s1109_s12 = smov 0   ;;  %s1111_s13 = smov 0  }
   0x5   :  { %s1113_s14 = smov 0   ;;  %s1115_s15 = smov 0  }
   0x6   :  { %s1117_s16 = smov 0   ;;  %s1119_s17 = smov 0  }
   0x7 LB: > { %s736_s18 = sadd.s32 4294967295, %s1077_s17   ;;  %s737_s19 = sadd.s32 4294967294, %s1077_s17   ;;  %s1077_s17 = sphi %s1119_s17, %s20_s17   ;;  %s1073_s16 = sphi %s1117_s16, %s1388_s16   ;;  %s1069_s15 = sphi %s1115_s15, %s1387_s15   ;;  %s1065_s14 = sphi %s1113_s14, %s1386_s14   ;;  %s1061_s13 = sphi %s1111_s13, %s1385_s13   ;;  %s1057_s12 = sphi %s1109_s12, %s1384_s12  }
   0x8   : > { %p54_p0 = scmp.ne.s32.totalorder %s1061_s13, %s1057_s12  ;;  %p1143_p1 = scmp.eq.s32.totalorder %s736_s18, 0 }
   0x9   : > { %p1147_p2 = scmp.eq.s32.totalorder %s736_s18, 1  ;;  %p128_p3 = scmp.eq.s32.totalorder %s737_s19, 1 }
   0xa   : > { %p1153_p4 = por %p1143_p1, %p54_p0  ;;  %p738_p5 = scmp.ge.s32.totalorder %s1077_s17, 1 }
   0xb   : > { %p1158_p6 = por %p128_p3, %p54_p0  ;;  %p135_p7 = scmp.lt.s32.totalorder %s1077_s17, 3 }
   0xc   : > { %s1374_s22 = scalar_select %p1153_p4, 1, 0 }
   0xd   : > { %s1375_s23 = scalar_select %p1158_p6, 1, 0 }
   0xe   : > { %p1163_p8 = pnand %p738_p5, %p135_p7  ;;  %s1079_s25 = smov [#allocation5]  }
   0xf   : > { %s147_s26 = sshll.u32 %s1079_s25, 4  ;;  %s32_s28 = sadd.s32 1, %s1073_s16  ;;  %s148_s26 = int_to_ptr.vmem [resolvable:$true] %s147_s26 }
  0x10   : > { %p835_p9 = pneg %p1163_p8  ;;  %s950_s29 = scalar_lea.vmem %s148_s26, 2048 }
  0x11   : > { %p951_p13 = scmp.ne.s32.totalorder %s148_s26, %s950_s29  ;;  %p958_p5 = scmp.lt.s32.totalorder %s148_s26, %s148_s26 }
  0x12   : > { %p1172_p11 = pnand %p835_p9, %p1143_p1  ;;  %p959_p7 = scmp.lt.s32.totalorder %s950_s29, %s950_s29 }
  0x14   : > { %p941_p12 = pneg %p1172_p11  ;;  %p960_p6 = por %p959_p7, %p958_p5 }
  0x16   : > { %p953_p0 = pnand %p951_p13, %p941_p12 }
  0x18   : > { %p954_p3 = pneg %p953_p0 }
  0x1a   : > { %p961_p4 = pnand %p960_p6, %p954_p3 }
  0x1c   : > { %964 = shalt.err (!%p961_p4)
}
  0x1d   : > { %s1080_s30 = smov 128   ;;  %s1081_s4 = smov 8  }
  0x1e   : > { %838 = dma.hbm_to_vmem [thread:$0]  (!%p1172_p11), %s1368_s1, 2048, %s148_s26, [#allocation6], %s1080_s30, %s1080_s30, %s1081_s4  }
  0x1f   : > { %p34_p6 = scmp.ge.s32.totalorder %s32_s28, 2  ;;  %s41_s7 = sadd.s32 1, %s1065_s14 }
  0x20   : > { %p48_p4 = scmp.ne.s32.totalorder %s1065_s14, %s1061_s13  ;;  %p49_p9 = scmp.eq.s32.totalorder %s1077_s17, 0 }
  0x21   : > { %s1390_s28 = smov (%p34_p6, %s32_s28), 0  ;;  %p848_p0 = scmp.lt.s32.totalorder %s1077_s17, 2 }
  0x22   : > { %p1190_p12 = por %p49_p9, %p48_p4  ;;  %p1196_p13 = por %p1147_p2, %p48_p4 }
  0x23   : > { %s36_s10 = ssub.s32 %s1073_s16, %s1390_s28  ;;  %s164_s11 = sand.u32 1, %s1065_s14  }
  0x24   : > { %p39_p11 = scmp.eq.s32.totalorder %s36_s10, 0  ;;  %s741_s18 = sshll.u32 %s164_s11, 6 }
  0x25   : > { %s793_s25 = sshll.u32 %s1073_s16, 10  ;;  %s168_s30 = scalar_lea.vmem [#allocation2], %s741_s18 }
  0x26   : > { %s1205_s19 = scalar_select %p39_p11, %s1065_s14, %s41_s7  }
  0x27   : > { %s176_s29 = scalar_lea.hbm %s1367_s0, %s793_s25  ;;  %s177_s4 = sshll.u32 %s168_s30, 4  ;;  %s178_s4 = int_to_ptr.vmem [resolvable:$true] %s177_s4 }
  0x28   : > { %p1213_p2 = pnand %p848_p0, %p1190_p12  ;;  %s165_s5 = scalar_lea.sflag [#allocation3], %s164_s11 }
  0x29   : > { %s978_s6 = scalar_lea.vmem %s178_s4, 1024  ;;  %s1082_s7 = smov [#allocation2]  }
  0x2a   : > { %p967_p3 = pneg %p1213_p2  ;;  %p979_p5 = scmp.ne.s32.totalorder %s178_s4, %s978_s6 }
  0x2b   : > { %s983_s10 = sshll.u32 %s1082_s7, 4  ;;  %s984_s10 = int_to_ptr.vmem [resolvable:$false] %s983_s10 }
  0x2c   : > { %p981_p7 = pnand %p979_p5, %p967_p3  ;;  %s985_s25 = scalar_lea.vmem %s984_s10, 2048 }
  0x2d   : > { %p986_p4 = scmp.lt.s32.totalorder %s178_s4, %s984_s10  ;;  %p987_p9 = scmp.lt.s32.totalorder %s985_s25, %s978_s6 }
  0x2e   : > { %p982_p6 = pneg %p981_p7 }
  0x2f   : > { %p988_p11 = por %p987_p9, %p986_p4 }
  0x31   : > { %p989_p10 = pnand %p988_p11, %p982_p6 }
  0x33   : > { %992 = shalt.err (!%p989_p10)
}
  0x34   : > { %s1083_s8 = smov 64   ;;  %s1084_s18 = smov 4  }
  0x35   : > { %842 = dma.hbm_to_vmem [thread:$0]  (!%p1213_p2), %s176_s29, 1024, %s178_s4, %s165_s5, %s1083_s8, %s1083_s8, %s1084_s18  }
  0x36   : > { %189 = sbr.rel (%p1163_p8) target bundleno = 337 (0x151), region = 32  ;;  %s1224_s11 = sand.u32 (!%p1163_p8), 1, %s1061_s13  }
  0x37   : > { %s745_s26 = sshll.u32 (!%p1163_p8), %s1224_s11, 6  ;;  %s192_s27 = scalar_lea.sflag (!%p1163_p8), [#allocation3], %s1224_s11 }
  0x38   : > { %s1228_s30 = scalar_lea.vmem (!%p1163_p8), [#allocation2], %s745_s26  ;;  %p1381_p12 = scmp.ne.s32.totalorder (!%p1163_p8), %s1374_s22, 0 }
  0x3b   : > { %1044 = dma.done.wait (%p1381_p12), %s192_s27, 1024  }
  0x3c   : > { %1046 = vsyncadd (%p1381_p12), %s192_s27, 4294966272 }
  0x3d   : > { %1048 = dma.done.wait (%p1143_p1), [#allocation6], 2048  }
  0x3e   : > { %1050 = vsyncadd (%p1143_p1), [#allocation6], 4294965248  ;;  %v1085_v0 = vmov 0   ;;  %v907_v1 = vld [vmem:[#allocation5 + $0x74] ss:$8 sps:$4 sm:$0xff]   ;;  %v931_v17 = vld [vmem:[%s1228_s30] sm:$0xff]   ;;  %v259_v25 = vlaneseq }
  0x3f   : > { %429 = vmatprep.mubr.bf16.mxu0 %v1085_v0  ;;  %469 = vmatprep.mubr.bf16.mxu1 %v1085_v0  ;;  %v909_v2 = vld [vmem:[#allocation5 + $0x70] ss:$8 sps:$4 sm:$0xff]   ;;  %v910_v3 = vld [vmem:[#allocation5 + $0x64] ss:$8 sps:$4 sm:$0xff]   ;;  %v912_v4 = vld [vmem:[#allocation5 + $0x60] ss:$8 sps:$4 sm:$0xff]  }
  0x40   : > { %397 = vmatprep.subr.bf16.mxu0 %v907_v1  ;;  %811 = vmatprep.subr.bf16.mxu1 %v907_v1  ;;  %v913_v5 = vld [vmem:[#allocation5 + $0x54] ss:$8 sps:$4 sm:$0xff]   ;;  %v915_v6 = vld [vmem:[#allocation5 + $0x50] ss:$8 sps:$4 sm:$0xff]   ;;  %v916_v7 = vld [vmem:[#allocation5 + $0x44] ss:$8 sps:$4 sm:$0xff]  }
  0x41   : > { %398 = vmatpush1.bf16.msra.mxu0 %v909_v2  ;;  %819 = vmatpush1.bf16.msra.mxu1 %v909_v2  ;;  %v918_v8 = vld [vmem:[#allocation5 + $0x40] ss:$8 sps:$4 sm:$0xff]   ;;  %v919_v9 = vld [vmem:[#allocation5 + $0x34] ss:$8 sps:$4 sm:$0xff]   ;;  %v921_v10 = vld [vmem:[#allocation5 + $0x30] ss:$8 sps:$4 sm:$0xff]  }
  0x42   : > { %399 = vmatprep.subr.bf16.mxu0 %v910_v3  ;;  %812 = vmatprep.subr.bf16.mxu1 %v910_v3  ;;  %v922_v11 = vld [vmem:[#allocation5 + $0x24] ss:$8 sps:$4 sm:$0xff]   ;;  %v924_v12 = vld [vmem:[#allocation5 + $0x20] ss:$8 sps:$4 sm:$0xff]   ;;  %v925_v13 = vld [vmem:[#allocation5 + $0x14] ss:$8 sps:$4 sm:$0xff]  }
  0x43   : > { %v927_v14 = vld [vmem:[#allocation5 + $0x10] ss:$8 sps:$4 sm:$0xff]   ;;  %v928_v15 = vld [vmem:[#allocation5 + $0x4] ss:$8 sps:$4 sm:$0xff]   ;;  %v930_v16 = vld [vmem:[#allocation5] ss:$8 sps:$4 sm:$0xff]  }
  0x44   : > { %v932_v18 = vld [vmem:[%s1228_s30 + $0x20] sm:$0xff]   ;;  %v933_v19 = vld [vmem:[%s1228_s30 + $0x8] sm:$0xff]   ;;  %v935_v21 = vld [vmem:[%s1228_s30 + $0x10] sm:$0xff]   ;;  %v260_v26 = vshrl.u32 %v259_v25, 7  ;;  %s747_s24 = sshll.u32 %s1224_s11, 7  ;;  %s810_s4 = sshll.u32 %s1069_s15, 11 }
  0x45   : > { %400 = vmatpush1.bf16.msra.mxu0 %v912_v4  ;;  %820 = vmatpush1.bf16.msra.mxu1 %v912_v4  ;;  %v934_v20 = vld [vmem:[%s1228_s30 + $0x28] sm:$0xff]   ;;  %v936_v22 = vld [vmem:[%s1228_s30 + $0x30] sm:$0xff]   ;;  %v937_v23 = vld [vmem:[%s1228_s30 + $0x18] sm:$0xff]   ;;  %s1266_s29 = scalar_lea.vmem [#allocation7], %s747_s24  ;;  %s1315_s7 = scalar_lea.hbm %s1370_s3, %s810_s4 }
  0x46   : > { %401 = vmatprep.subr.bf16.mxu0 %v913_v5  ;;  %813 = vmatprep.subr.bf16.mxu1 %v913_v5  ;;  %v938_v24 = vld [vmem:[%s1228_s30 + $0x38] sm:$0xff]   ;;  %v261_v27 = vsub.s32 0, %v260_v26  ;;  %v265_v28 = vsub.s32 1, %v260_v26  ;;  %v257_v29 = vld [vmem:[%s1369_s2] sm:$0x3]  ;;  %s639_s21 = sshll.u32 %s1266_s29, 4  ;;  %s1317_s21 = int_to_ptr.vmem [resolvable:$true] %s639_s21 }
  0x47   : > { %s623_s15 = scalar_lea.sflag [#allocation4], %s1224_s11  ;;  %s993_s10 = scalar_lea.vmem %s1317_s21, 2048 }
  0x48   : > { %v1257_v30 = vrot.slane %v257_v29, %v261_v27  ;;  %v1259_v31 = vrot.slane %v257_v29, %v265_v28  ;;  %p994_p1 = scmp.ne.s32.totalorder %s1317_s21, %s993_s10  ;;  %s1086_s25 = smov [#allocation7]  }
  0x49   : > { %402 = vmatpush1.bf16.msra.mxu0 %v915_v6  ;;  %821 = vmatpush1.bf16.msra.mxu1 %v915_v6  ;;  %s997_s8 = sshll.u32 %s1086_s25, 4  ;;  %s998_s8 = int_to_ptr.vmem [resolvable:$false] %s997_s8 }
  0x4a   : > { %403 = vmatprep.subr.bf16.mxu0 %v916_v7  ;;  %814 = vmatprep.subr.bf16.mxu1 %v916_v7  ;;  %p995_p8 = pnand %p994_p1, %p1196_p13  ;;  %s999_s18 = scalar_lea.vmem %s998_s8, 4096 }
  0x4b   : > { %p1000_p0 = scmp.lt.s32.totalorder %s1317_s21, %s998_s8  ;;  %p1001_p2 = scmp.lt.s32.totalorder %s999_s18, %s993_s10 }
  0x4c   : > { %p996_p10 = pneg %p995_p8 }
  0x4d   : > { %404 = vmatpush1.bf16.msra.mxu0 %v918_v8  ;;  %822 = vmatpush1.bf16.msra.mxu1 %v918_v8  ;;  %p1002_p3 = por %p1001_p2, %p1000_p0 }
  0x4e   : > { %405 = vmatprep.subr.bf16.mxu0 %v919_v9  ;;  %815 = vmatprep.subr.bf16.mxu1 %v919_v9 }
  0x4f   : > { %p1003_p5 = pnand %p1002_p3, %p996_p10 }
  0x51   : > { %406 = vmatpush1.bf16.msra.mxu0 %v921_v10  ;;  %823 = vmatpush1.bf16.msra.mxu1 %v921_v10 }
  0x52   : > { %407 = vmatprep.subr.bf16.mxu0 %v922_v11  ;;  %816 = vmatprep.subr.bf16.mxu1 %v922_v11 }
  0x55   : > { %408 = vmatpush1.bf16.msra.mxu0 %v924_v12  ;;  %824 = vmatpush1.bf16.msra.mxu1 %v924_v12 }
  0x56   : > { %409 = vmatprep.subr.bf16.mxu0 %v925_v13  ;;  %817 = vmatprep.subr.bf16.mxu1 %v925_v13 }
  0x59   : > { %410 = vmatpush1.bf16.msra.mxu0 %v927_v14  ;;  %825 = vmatpush1.bf16.msra.mxu1 %v927_v14 }
  0x5a   : > { %411 = vmatprep.subr.bf16.mxu0 %v928_v15  ;;  %818 = vmatprep.subr.bf16.mxu1 %v928_v15 }
  0x5d   : > { %412 = vmatpush1.bf16.msra.mxu0 %v930_v16  ;;  %826 = vmatpush1.bf16.msra.mxu1 %v930_v16 }
  0x60   : > { %430 = vmatmul.mubr.bf16.vlgmr.msra.gmra.mxu0 %v931_v17  ;;  %470 = vmatmul.mubr.bf16.vlgmr.msra.gmra.mxu1 %v932_v18 }
  0x61   : > { %439 = vmatprep.mubr.bf16.mxu0 %v1085_v0  ;;  %479 = vmatprep.mubr.bf16.mxu1 %v1085_v0 }
  0x68   : > { %440 = vmatmul.mubr.bf16.gmra.mxu0 %v933_v19  ;;  %480 = vmatmul.mubr.bf16.gmra.mxu1 %v934_v20 }
  0x69   : > { %449 = vmatprep.mubr.bf16.mxu0 %v1085_v0  ;;  %489 = vmatprep.mubr.bf16.mxu1 %v1085_v0 }
  0x70   : > { %450 = vmatmul.mubr.bf16.gmra.mxu0 %v935_v21  ;;  %490 = vmatmul.mubr.bf16.gmra.mxu1 %v936_v22 }
  0x71   : > { %459 = vmatprep.mubr.bf16.mxu0 %v1085_v0  ;;  %499 = vmatprep.mubr.bf16.mxu1 %v1085_v0 }
  0x78   : > { %460 = vmatmul.mubr.bf16.gmra.mxu0 %v937_v23  ;;  %500 = vmatmul.mubr.bf16.gmra.mxu1 %v938_v24 }
 0x120   : > { %v431_v32 = vpop.f32.mrf.mxu0  ;;  %v471_v33 = vpop.f32.mrf.mxu1 }
 0x121   : > { %v432_v36 = vadd.f32 %v431_v32, %v1257_v30  ;;  %v472_v37 = vadd.f32 %v471_v33, %v1257_v30 }
 0x122   : > { %v433_v34 = vpop.f32.mrf.mxu0  ;;  %v473_v35 = vpop.f32.mrf.mxu1 }
 0x123   : > { %v434_v38 = vadd.f32 %v433_v34, %v1259_v31  ;;  %v474_v39 = vadd.f32 %v473_v35, %v1259_v31 }
 0x124   : > { %v435_v40 = vpop.f32.mrf.mxu0  ;;  %v475_v41 = vpop.f32.mrf.mxu1 }
 0x125   : > { %v794_v42 = vpack.c.bf16 %v434_v38, %v432_v36  ;;  %v802_v43 = vpack.c.bf16 %v474_v39, %v472_v37  ;;  %v436_v46 = vadd.f32 %v435_v40, %v1257_v30  ;;  %v476_v47 = vadd.f32 %v475_v41, %v1257_v30 }
 0x126   : > { %v437_v44 = vpop.f32.mrf.mxu0  ;;  %v477_v45 = vpop.f32.mrf.mxu1 }
 0x127   : > { %606 = vst [vmem:[%s1266_s29] sm:$0xff] %v794_v42  ;;  %614 = vst [vmem:[%s1266_s29 + $0x40] sm:$0xff] %v802_v43  ;;  %v438_v48 = vadd.f32 %v437_v44, %v1259_v31  ;;  %v478_v49 = vadd.f32 %v477_v45, %v1259_v31 }
 0x128   : > { %v441_v50 = vpop.f32.mrf.mxu0  ;;  %v481_v51 = vpop.f32.mrf.mxu1 }
 0x129   : > { %v795_v52 = vpack.c.bf16 %v438_v48, %v436_v46  ;;  %v803_v53 = vpack.c.bf16 %v478_v49, %v476_v47  ;;  %v442_v56 = vadd.f32 %v441_v50, %v1257_v30  ;;  %v482_v57 = vadd.f32 %v481_v51, %v1257_v30 }
 0x12a   : > { %v443_v54 = vpop.f32.mrf.mxu0  ;;  %v483_v55 = vpop.f32.mrf.mxu1 }
 0x12b   : > { %607 = vst [vmem:[%s1266_s29 + $0x8] sm:$0xff] %v795_v52  ;;  %615 = vst [vmem:[%s1266_s29 + $0x48] sm:$0xff] %v803_v53  ;;  %v444_v58 = vadd.f32 %v443_v54, %v1259_v31  ;;  %v484_v59 = vadd.f32 %v483_v55, %v1259_v31 }
 0x12c   : > { %v445_v60 = vpop.f32.mrf.mxu0  ;;  %v485_v61 = vpop.f32.mrf.mxu1 }
 0x12d   : > { %v796_v62 = vpack.c.bf16 %v444_v58, %v442_v56  ;;  %v804_v63 = vpack.c.bf16 %v484_v59, %v482_v57  ;;  %v446_v2 = vadd.f32 %v445_v60, %v1257_v30  ;;  %v486_v3 = vadd.f32 %v485_v61, %v1257_v30 }
 0x12e   : > { %v447_v0 = vpop.f32.mrf.mxu0  ;;  %v487_v1 = vpop.f32.mrf.mxu1 }
 0x12f   : > { %608 = vst [vmem:[%s1266_s29 + $0x10] sm:$0xff] %v796_v62  ;;  %616 = vst [vmem:[%s1266_s29 + $0x50] sm:$0xff] %v804_v63  ;;  %v448_v4 = vadd.f32 %v447_v0, %v1259_v31  ;;  %v488_v5 = vadd.f32 %v487_v1, %v1259_v31 }
 0x130   : > { %v451_v6 = vpop.f32.mrf.mxu0  ;;  %v491_v7 = vpop.f32.mrf.mxu1 }
 0x131   : > { %v797_v8 = vpack.c.bf16 %v448_v4, %v446_v2  ;;  %v805_v9 = vpack.c.bf16 %v488_v5, %v486_v3  ;;  %v452_v12 = vadd.f32 %v451_v6, %v1257_v30  ;;  %v492_v13 = vadd.f32 %v491_v7, %v1257_v30 }
 0x132   : > { %v453_v10 = vpop.f32.mrf.mxu0  ;;  %v493_v11 = vpop.f32.mrf.mxu1 }
 0x133   : > { %609 = vst [vmem:[%s1266_s29 + $0x18] sm:$0xff] %v797_v8  ;;  %617 = vst [vmem:[%s1266_s29 + $0x58] sm:$0xff] %v805_v9  ;;  %v454_v14 = vadd.f32 %v453_v10, %v1259_v31  ;;  %v494_v15 = vadd.f32 %v493_v11, %v1259_v31 }
 0x134   : > { %v455_v16 = vpop.f32.mrf.mxu0  ;;  %v495_v17 = vpop.f32.mrf.mxu1 }
 0x135   : > { %v798_v18 = vpack.c.bf16 %v454_v14, %v452_v12  ;;  %v806_v19 = vpack.c.bf16 %v494_v15, %v492_v13  ;;  %v456_v22 = vadd.f32 %v455_v16, %v1257_v30  ;;  %v496_v23 = vadd.f32 %v495_v17, %v1257_v30 }
 0x136   : > { %v457_v20 = vpop.f32.mrf.mxu0  ;;  %v497_v21 = vpop.f32.mrf.mxu1 }
 0x137   : > { %610 = vst [vmem:[%s1266_s29 + $0x20] sm:$0xff] %v798_v18  ;;  %618 = vst [vmem:[%s1266_s29 + $0x60] sm:$0xff] %v806_v19  ;;  %v458_v24 = vadd.f32 %v457_v20, %v1259_v31  ;;  %v498_v25 = vadd.f32 %v497_v21, %v1259_v31 }
 0x138   : > { %v461_v26 = vpop.f32.mrf.mxu0  ;;  %v501_v27 = vpop.f32.mrf.mxu1 }
 0x139   : > { %v799_v28 = vpack.c.bf16 %v458_v24, %v456_v22  ;;  %v807_v29 = vpack.c.bf16 %v498_v25, %v496_v23  ;;  %v462_v34 = vadd.f32 %v461_v26, %v1257_v30  ;;  %v502_v35 = vadd.f32 %v501_v27, %v1257_v30 }
 0x13a   : > { %v463_v32 = vpop.f32.mrf.mxu0  ;;  %v503_v33 = vpop.f32.mrf.mxu1 }
 0x13b   : > { %611 = vst [vmem:[%s1266_s29 + $0x28] sm:$0xff] %v799_v28  ;;  %619 = vst [vmem:[%s1266_s29 + $0x68] sm:$0xff] %v807_v29  ;;  %v464_v36 = vadd.f32 %v463_v32, %v1259_v31  ;;  %v504_v37 = vadd.f32 %v503_v33, %v1259_v31 }
 0x13c   : > { %v465_v38 = vpop.f32.mrf.mxu0  ;;  %v505_v39 = vpop.f32.mrf.mxu1 }
 0x13d   : > { %v800_v40 = vpack.c.bf16 %v464_v36, %v462_v34  ;;  %v808_v41 = vpack.c.bf16 %v504_v37, %v502_v35  ;;  %v466_v44 = vadd.f32 %v465_v38, %v1257_v30  ;;  %v506_v45 = vadd.f32 %v505_v39, %v1257_v30 }
 0x13e   : > { %v467_v42 = vpop.f32.mrf.mxu0  ;;  %v507_v43 = vpop.f32.mrf.mxu1 }
 0x13f   : > { %612 = vst [vmem:[%s1266_s29 + $0x30] sm:$0xff] %v800_v40  ;;  %620 = vst [vmem:[%s1266_s29 + $0x70] sm:$0xff] %v808_v41  ;;  %v468_v46 = vadd.f32 %v467_v42, %v1259_v31  ;;  %v508_v47 = vadd.f32 %v507_v43, %v1259_v31 }
 0x141   : > { %v801_v48 = vpack.c.bf16 %v468_v46, %v466_v44  ;;  %v809_v49 = vpack.c.bf16 %v508_v47, %v506_v45 }
 0x143   : > { %613 = vst [vmem:[%s1266_s29 + $0x38] sm:$0xff] %v801_v48  ;;  %621 = vst [vmem:[%s1266_s29 + $0x78] sm:$0xff] %v809_v49 }
 0x144   : > { %1006 = shalt.err (!%p1003_p5)
}
 0x145   : > { %s1007_s26 = scalar_lea.hbm %s1315_s7, 2048  ;;  %s1011_s20 = scalar_lea.hbm %s1370_s3, 4096 }
 0x146   : > { %p1008_p7 = scmp.ne.s32.totalorder %s1315_s7, %s1007_s26  ;;  %p1012_p9 = scmp.lt.s32.totalorder %s1315_s7, %s1370_s3 }
 0x147   : > { %p1013_p11 = scmp.lt.s32.totalorder %s1011_s20, %s1007_s26 }
 0x148   : > { %p1009_p6 = pnand %p1008_p7, %p1196_p13 }
 0x149   : > { %p1014_p12 = por %p1013_p11, %p1012_p9 }
 0x14a   : > { %p1010_p4 = pneg %p1009_p6 }
 0x14c   : > { %p1015_p1 = pnand %p1014_p12, %p1010_p4 }
 0x14e   : > { %1018 = shalt.err (!%p1015_p1)
}
 0x14f   : > { %s1087_s29 = smov 128   ;;  %s1088_s4 = smov 8  }
 0x150   : > { %833 = dma.vmem_to_hbm [thread:$0]  (%p1196_p13), %s1317_s21, 2048, %s1315_s7, %s623_s15, %s1087_s29, %s1087_s29, %s1088_s4  }
 0x151 PF: > { %s654_s5 = sand.u32 1, %s1057_s12   ;;  %p1382_p8 = scmp.ne.s32.totalorder %s1375_s23, 0 }
 0x152   : > { %p1383_p10 = scmp.ge.s32.totalorder %s1077_s17, 2  ;;  %s655_s6 = scalar_lea.sflag [#allocation4], %s654_s5 }
 0x154   : > { %p844_p0 = pnand %p1383_p10, %p1382_p8 }
 0x156   : > { %p845_p2 = pneg %p844_p0 }
 0x158   : > { %1052 = dma.done.wait (%p845_p2), %s655_s6, 2048  }
 0x159   : > { %1054 = vsyncadd (%p845_p2), %s655_s6, 4294965248  ;;  %s20_s17 = sadd.s32 1, %s1077_s17   ;;  %s1384_s12 = smov %s1061_s13 }
 0x15a   : > { %p17_p3 = scmp.ge.s32.totalorder %s20_s17, 4   ;;  %s1385_s13 = smov %s1065_s14 }
 0x15b   : > { %s1386_s14 = smov %s1205_s19  ;;  %s1387_s15 = smov %s1073_s16 }
 0x15c   : > { %s1388_s16 = smov %s1390_s28  ;;  %19 = sbr.rel (!%p17_p3) target bundleno = 7 (0x7), region = 81 }
 0x161   :  { %660 = vsyncpa [#allocation3], 1 }
 0x162   :  { %662 = vsyncpa [#allocation3 + $0x1], 1 }
 0x163   :  { %663 = vsyncpa [#allocation6], 1 }
 0x164   :  { %664 = vsyncpa [#allocation4], 1 }
 0x165   :  { %666 = vsyncpa [#allocation4 + $0x1], 1 }

// kernel: tpu_custom_call.1
= control target key start
LH: loop header
LB: loop body
LE: loop exit
PB: predicated region body
PF: predicated region fallthrough
CT: control target
= control target key end

     0   :  { %8 = vsyncpa [#allocation3], 0  ;;  %s1367_s0 = inlined_call_operand.hbm [shape: bf16[2,128,128], index: 0, kind: input, shape index: {}]   ;;  %s1368_s1 = inlined_call_operand.hbm [shape: bf16[128,256], index: 1, kind: input, shape index: {}]   ;;  %s1369_s2 = inlined_call_operand.vmem [shape: f32[1,256], index: 2, kind: input, shape index: {}]   ;;  %s1370_s3 = inlined_call_operand.hbm [shape: bf16[2,128,256], index: 3, kind: output, shape index: {}]  }
   0x1   :  { %10 = vsyncpa [#allocation3 + $0x1], 0 }
   0x2   :  { %11 = vsyncpa [#allocation6], 0 }
   0x3   :  { %12 = vsyncpa [#allocation4], 0 }
   0x4   :  { %14 = vsyncpa [#allocation4 + $0x1], 0  ;;  %s1109_s12 = smov 0   ;;  %s1111_s13 = smov 0  }
   0x5   :  { %s1113_s14 = smov 0   ;;  %s1115_s15 = smov 0  }
   0x6   :  { %s1117_s16 = smov 0   ;;  %s1119_s17 = smov 0  }
   0x7 LB: > { %s736_s18 = sadd.s32 4294967295, %s1077_s17   ;;  %s737_s19 = sadd.s32 4294967294, %s1077_s17   ;;  %s1077_s17 = sphi %s1119_s17, %s20_s17   ;;  %s1073_s16 = sphi %s1117_s16, %s1388_s16   ;;  %s1069_s15 = sphi %s1115_s15, %s1387_s15   ;;  %s1065_s14 = sphi %s1113_s14, %s1386_s14   ;;  %s1061_s13 = sphi %s1111_s13, %s1385_s13   ;;  %s1057_s12 = sphi %s1109_s12, %s1384_s12  }
   0x8   : > { %p54_p0 = scmp.ne.s32.totalorder %s1061_s13, %s1057_s12  ;;  %p1143_p1 = scmp.eq.s32.totalorder %s736_s18, 0 }
   0x9   : > { %p1147_p2 = scmp.eq.s32.totalorder %s736_s18, 1  ;;  %p128_p3 = scmp.eq.s32.totalorder %s737_s19, 1 }
   0xa   : > { %p1153_p4 = por %p1143_p1, %p54_p0  ;;  %p738_p5 = scmp.ge.s32.totalorder %s1077_s17, 1 }
   0xb   : > { %p1158_p6 = por %p128_p3, %p54_p0  ;;  %p135_p7 = scmp.lt.s32.totalorder %s1077_s17, 3 }
   0xc   : > { %s1374_s22 = scalar_select %p1153_p4, 1, 0 }
   0xd   : > { %s1375_s23 = scalar_select %p1158_p6, 1, 0 }
   0xe   : > { %p1163_p8 = pnand %p738_p5, %p135_p7  ;;  %s1079_s25 = smov [#allocation5]  }
   0xf   : > { %s147_s26 = sshll.u32 %s1079_s25, 4  ;;  %s32_s28 = sadd.s32 1, %s1073_s16  ;;  %s148_s26 = int_to_ptr.vmem [resolvable:$true] %s147_s26 }
  0x10   : > { %p835_p9 = pneg %p1163_p8  ;;  %s950_s29 = scalar_lea.vmem %s148_s26, 2048 }
  0x11   : > { %p951_p13 = scmp.ne.s32.totalorder %s148_s26, %s950_s29  ;;  %p958_p5 = scmp.lt.s32.totalorder %s148_s26, %s148_s26 }
  0x12   : > { %p1172_p11 = pnand %p835_p9, %p1143_p1  ;;  %p959_p7 = scmp.lt.s32.totalorder %s950_s29, %s950_s29 }
  0x14   : > { %p941_p12 = pneg %p1172_p11  ;;  %p960_p6 = por %p959_p7, %p958_p5 }
  0x16   : > { %p953_p0 = pnand %p951_p13, %p941_p12 }
  0x18   : > { %p954_p3 = pneg %p953_p0 }
  0x1a   : > { %p961_p4 = pnand %p960_p6, %p954_p3 }
  0x1c   : > { %964 = shalt.err (!%p961_p4)
}
  0x1d   : > { %s1080_s30 = smov 128   ;;  %s1081_s4 = smov 8  }
  0x1e   : > { %838 = dma.hbm_to_vmem [thread:$0]  (!%p1172_p11), %s1368_s1, 2048, %s148_s26, [#allocation6], %s1080_s30, %s1080_s30, %s1081_s4  }
  0x1f   : > { %p34_p6 = scmp.ge.s32.totalorder %s32_s28, 2  ;;  %s41_s7 = sadd.s32 1, %s1065_s14 }
  0x20   : > { %p48_p4 = scmp.ne.s32.totalorder %s1065_s14, %s1061_s13  ;;  %p49_p9 = scmp.eq.s32.totalorder %s1077_s17, 0 }
  0x21   : > { %s1390_s28 = smov (%p34_p6, %s32_s28), 0  ;;  %p848_p0 = scmp.lt.s32.totalorder %s1077_s17, 2 }
  0x22   : > { %p1190_p12 = por %p49_p9, %p48_p4  ;;  %p1196_p13 = por %p1147_p2, %p48_p4 }
  0x23   : > { %s36_s10 = ssub.s32 %s1073_s16, %s1390_s28  ;;  %s164_s11 = sand.u32 1, %s1065_s14  }
  0x24   : > { %p39_p11 = scmp.eq.s32.totalorder %s36_s10, 0  ;;  %s741_s18 = sshll.u32 %s164_s11, 6 }
  0x25   : > { %s793_s25 = sshll.u32 %s1073_s16, 10  ;;  %s168_s30 = scalar_lea.vmem [#allocation2], %s741_s18 }
  0x26   : > { %s1205_s19 = scalar_select %p39_p11, %s1065_s14, %s41_s7  }
  0x27   : > { %s176_s29 = scalar_lea.hbm %s1367_s0, %s793_s25  ;;  %s177_s4 = sshll.u32 %s168_s30, 4  ;;  %s178_s4 = int_to_ptr.vmem [resolvable:$true] %s177_s4 }
  0x28   : > { %p1213_p2 = pnand %p848_p0, %p1190_p12  ;;  %s165_s5 = scalar_lea.sflag [#allocation3], %s164_s11 }
  0x29   : > { %s978_s6 = scalar_lea.vmem %s178_s4, 1024  ;;  %s1082_s7 = smov [#allocation2]  }
  0x2a   : > { %p967_p3 = pneg %p1213_p2  ;;  %p979_p5 = scmp.ne.s32.totalorder %s178_s4, %s978_s6 }
  0x2b   : > { %s983_s10 = sshll.u32 %s1082_s7, 4  ;;  %s984_s10 = int_to_ptr.vmem [resolvable:$false] %s983_s10 }
  0x2c   : > { %p981_p7 = pnand %p979_p5, %p967_p3  ;;  %s985_s25 = scalar_lea.vmem %s984_s10, 2048 }
  0x2d   : > { %p986_p4 = scmp.lt.s32.totalorder %s178_s4, %s984_s10  ;;  %p987_p9 = scmp.lt.s32.totalorder %s985_s25, %s978_s6 }
  0x2e   : > { %p982_p6 = pneg %p981_p7 }
  0x2f   : > { %p988_p11 = por %p987_p9, %p986_p4 }
  0x31   : > { %p989_p10 = pnand %p988_p11, %p982_p6 }
  0x33   : > { %992 = shalt.err (!%p989_p10)
}
  0x34   : > { %s1083_s8 = smov 64   ;;  %s1084_s18 = smov 4  }
  0x35   : > { %842 = dma.hbm_to_vmem [thread:$0]  (!%p1213_p2), %s176_s29, 1024, %s178_s4, %s165_s5, %s1083_s8, %s1083_s8, %s1084_s18  }
  0x36   : > { %189 = sbr.rel (%p1163_p8) target bundleno = 337 (0x151), region = 32  ;;  %s1224_s11 = sand.u32 (!%p1163_p8), 1, %s1061_s13  }
  0x37   : > { %s745_s26 = sshll.u32 (!%p1163_p8), %s1224_s11, 6  ;;  %s192_s27 = scalar_lea.sflag (!%p1163_p8), [#allocation3], %s1224_s11 }
  0x38   : > { %s1228_s30 = scalar_lea.vmem (!%p1163_p8), [#allocation2], %s745_s26  ;;  %p1381_p12 = scmp.ne.s32.totalorder (!%p1163_p8), %s1374_s22, 0 }
  0x3b   : > { %1044 = dma.done.wait (%p1381_p12), %s192_s27, 1024  }
  0x3c   : > { %1046 = vsyncadd (%p1381_p12), %s192_s27, 4294966272 }
  0x3d   : > { %1048 = dma.done.wait (%p1143_p1), [#allocation6], 2048  }
  0x3e   : > { %1050 = vsyncadd (%p1143_p1), [#allocation6], 4294965248  ;;  %v1085_v0 = vmov 0   ;;  %v907_v1 = vld [vmem:[#allocation5 + $0x74] ss:$8 sps:$4 sm:$0xff]   ;;  %v931_v17 = vld [vmem:[%s1228_s30] sm:$0xff]   ;;  %v259_v25 = vlaneseq }
  0x3f   : > { %429 = vmatprep.mubr.bf16.mxu0 %v1085_v0  ;;  %469 = vmatprep.mubr.bf16.mxu1 %v1085_v0  ;;  %v909_v2 = vld [vmem:[#allocation5 + $0x70] ss:$8 sps:$4 sm:$0xff]   ;;  %v910_v3 = vld [vmem:[#allocation5 + $0x64] ss:$8 sps:$4 sm:$0xff]   ;;  %v912_v4 = vld [vmem:[#allocation5 + $0x60] ss:$8 sps:$4 sm:$0xff]  }
  0x40   : > { %397 = vmatprep.subr.bf16.mxu0 %v907_v1  ;;  %811 = vmatprep.subr.bf16.mxu1 %v907_v1  ;;  %v913_v5 = vld [vmem:[#allocation5 + $0x54] ss:$8 sps:$4 sm:$0xff]   ;;  %v915_v6 = vld [vmem:[#allocation5 + $0x50] ss:$8 sps:$4 sm:$0xff]   ;;  %v916_v7 = vld [vmem:[#allocation5 + $0x44] ss:$8 sps:$4 sm:$0xff]  }
  0x41   : > { %398 = vmatpush1.bf16.msra.mxu0 %v909_v2  ;;  %819 = vmatpush1.bf16.msra.mxu1 %v909_v2  ;;  %v918_v8 = vld [vmem:[#allocation5 + $0x40] ss:$8 sps:$4 sm:$0xff]   ;;  %v919_v9 = vld [vmem:[#allocation5 + $0x34] ss:$8 sps:$4 sm:$0xff]   ;;  %v921_v10 = vld [vmem:[#allocation5 + $0x30] ss:$8 sps:$4 sm:$0xff]  }
  0x42   : > { %399 = vmatprep.subr.bf16.mxu0 %v910_v3  ;;  %812 = vmatprep.subr.bf16.mxu1 %v910_v3  ;;  %v922_v11 = vld [vmem:[#allocation5 + $0x24] ss:$8 sps:$4 sm:$0xff]   ;;  %v924_v12 = vld [vmem:[#allocation5 + $0x20] ss:$8 sps:$4 sm:$0xff]   ;;  %v925_v13 = vld [vmem:[#allocation5 + $0x14] ss:$8 sps:$4 sm:$0xff]  }
  0x43   : > { %v927_v14 = vld [vmem:[#allocation5 + $0x10] ss:$8 sps:$4 sm:$0xff]   ;;  %v928_v15 = vld [vmem:[#allocation5 + $0x4] ss:$8 sps:$4 sm:$0xff]   ;;  %v930_v16 = vld [vmem:[#allocation5] ss:$8 sps:$4 sm:$0xff]  }
  0x44   : > { %v932_v18 = vld [vmem:[%s1228_s30 + $0x20] sm:$0xff]   ;;  %v933_v19 = vld [vmem:[%s1228_s30 + $0x8] sm:$0xff]   ;;  %v935_v21 = vld [vmem:[%s1228_s30 + $0x10] sm:$0xff]   ;;  %v260_v26 = vshrl.u32 %v259_v25, 7  ;;  %s747_s24 = sshll.u32 %s1224_s11, 7  ;;  %s810_s4 = sshll.u32 %s1069_s15, 11 }
  0x45   : > { %400 = vmatpush1.bf16.msra.mxu0 %v912_v4  ;;  %820 = vmatpush1.bf16.msra.mxu1 %v912_v4  ;;  %v934_v20 = vld [vmem:[%s1228_s30 + $0x28] sm:$0xff]   ;;  %v936_v22 = vld [vmem:[%s1228_s30 + $0x30] sm:$0xff]   ;;  %v937_v23 = vld [vmem:[%s1228_s30 + $0x18] sm:$0xff]   ;;  %s1266_s29 = scalar_lea.vmem [#allocation7], %s747_s24  ;;  %s1315_s7 = scalar_lea.hbm %s1370_s3, %s810_s4 }
  0x46   : > { %401 = vmatprep.subr.bf16.mxu0 %v913_v5  ;;  %813 = vmatprep.subr.bf16.mxu1 %v913_v5  ;;  %v938_v24 = vld [vmem:[%s1228_s30 + $0x38] sm:$0xff]   ;;  %v261_v27 = vsub.s32 0, %v260_v26  ;;  %v265_v28 = vsub.s32 1, %v260_v26  ;;  %v257_v29 = vld [vmem:[%s1369_s2] sm:$0x3]  ;;  %s639_s21 = sshll.u32 %s1266_s29, 4  ;;  %s1317_s21 = int_to_ptr.vmem [resolvable:$true] %s639_s21 }
  0x47   : > { %s623_s15 = scalar_lea.sflag [#allocation4], %s1224_s11  ;;  %s993_s10 = scalar_lea.vmem %s1317_s21, 2048 }
  0x48   : > { %v1257_v30 = vrot.slane %v257_v29, %v261_v27  ;;  %v1259_v31 = vrot.slane %v257_v29, %v265_v28  ;;  %p994_p1 = scmp.ne.s32.totalorder %s1317_s21, %s993_s10  ;;  %s1086_s25 = smov [#allocation7]  }
  0x49   : > { %402 = vmatpush1.bf16.msra.mxu0 %v915_v6  ;;  %821 = vmatpush1.bf16.msra.mxu1 %v915_v6  ;;  %s997_s8 = sshll.u32 %s1086_s25, 4  ;;  %s998_s8 = int_to_ptr.vmem [resolvable:$false] %s997_s8 }
  0x4a   : > { %403 = vmatprep.subr.bf16.mxu0 %v916_v7  ;;  %814 = vmatprep.subr.bf16.mxu1 %v916_v7  ;;  %p995_p8 = pnand %p994_p1, %p1196_p13  ;;  %s999_s18 = scalar_lea.vmem %s998_s8, 4096 }
  0x4b   : > { %p1000_p0 = scmp.lt.s32.totalorder %s1317_s21, %s998_s8  ;;  %p1001_p2 = scmp.lt.s32.totalorder %s999_s18, %s993_s10 }
  0x4c   : > { %p996_p10 = pneg %p995_p8 }
  0x4d   : > { %404 = vmatpush1.bf16.msra.mxu0 %v918_v8  ;;  %822 = vmatpush1.bf16.msra.mxu1 %v918_v8  ;;  %p1002_p3 = por %p1001_p2, %p1000_p0 }
  0x4e   : > { %405 = vmatprep.subr.bf16.mxu0 %v919_v9  ;;  %815 = vmatprep.subr.bf16.mxu1 %v919_v9 }
  0x4f   : > { %p1003_p5 = pnand %p1002_p3, %p996_p10 }
  0x51   : > { %406 = vmatpush1.bf16.msra.mxu0 %v921_v10  ;;  %823 = vmatpush1.bf16.msra.mxu1 %v921_v10 }
  0x52   : > { %407 = vmatprep.subr.bf16.mxu0 %v922_v11  ;;  %816 = vmatprep.subr.bf16.mxu1 %v922_v11 }
  0x55   : > { %408 = vmatpush1.bf16.msra.mxu0 %v924_v12  ;;  %824 = vmatpush1.bf16.msra.mxu1 %v924_v12 }
  0x56   : > { %409 = vmatprep.subr.bf16.mxu0 %v925_v13  ;;  %817 = vmatprep.subr.bf16.mxu1 %v925_v13 }
  0x59   : > { %410 = vmatpush1.bf16.msra.mxu0 %v927_v14  ;;  %825 = vmatpush1.bf16.msra.mxu1 %v927_v14 }
  0x5a   : > { %411 = vmatprep.subr.bf16.mxu0 %v928_v15  ;;  %818 = vmatprep.subr.bf16.mxu1 %v928_v15 }
  0x5d   : > { %412 = vmatpush1.bf16.msra.mxu0 %v930_v16  ;;  %826 = vmatpush1.bf16.msra.mxu1 %v930_v16 }
  0x60   : > { %430 = vmatmul.mubr.bf16.vlgmr.msra.gmra.mxu0 %v931_v17  ;;  %470 = vmatmul.mubr.bf16.vlgmr.msra.gmra.mxu1 %v932_v18 }
  0x61   : > { %439 = vmatprep.mubr.bf16.mxu0 %v1085_v0  ;;  %479 = vmatprep.mubr.bf16.mxu1 %v1085_v0 }
  0x68   : > { %440 = vmatmul.mubr.bf16.gmra.mxu0 %v933_v19  ;;  %480 = vmatmul.mubr.bf16.gmra.mxu1 %v934_v20 }
  0x69   : > { %449 = vmatprep.mubr.bf16.mxu0 %v1085_v0  ;;  %489 = vmatprep.mubr.bf16.mxu1 %v1085_v0 }
  0x70   : > { %450 = vmatmul.mubr.bf16.gmra.mxu0 %v935_v21  ;;  %490 = vmatmul.mubr.bf16.gmra.mxu1 %v936_v22 }
  0x71   : > { %459 = vmatprep.mubr.bf16.mxu0 %v1085_v0  ;;  %499 = vmatprep.mubr.bf16.mxu1 %v1085_v0 }
  0x78   : > { %460 = vmatmul.mubr.bf16.gmra.mxu0 %v937_v23  ;;  %500 = vmatmul.mubr.bf16.gmra.mxu1 %v938_v24 }
 0x120   : > { %v431_v32 = vpop.f32.mrf.mxu0  ;;  %v471_v33 = vpop.f32.mrf.mxu1 }
 0x121   : > { %v432_v36 = vadd.f32 %v431_v32, %v1257_v30  ;;  %v472_v37 = vadd.f32 %v471_v33, %v1257_v30 }
 0x122   : > { %v433_v34 = vpop.f32.mrf.mxu0  ;;  %v473_v35 = vpop.f32.mrf.mxu1 }
 0x123   : > { %v434_v38 = vadd.f32 %v433_v34, %v1259_v31  ;;  %v474_v39 = vadd.f32 %v473_v35, %v1259_v31 }
 0x124   : > { %v435_v40 = vpop.f32.mrf.mxu0  ;;  %v475_v41 = vpop.f32.mrf.mxu1 }
 0x125   : > { %v794_v42 = vpack.c.bf16 %v434_v38, %v432_v36  ;;  %v802_v43 = vpack.c.bf16 %v474_v39, %v472_v37  ;;  %v436_v46 = vadd.f32 %v435_v40, %v1257_v30  ;;  %v476_v47 = vadd.f32 %v475_v41, %v1257_v30 }
 0x126   : > { %v437_v44 = vpop.f32.mrf.mxu0  ;;  %v477_v45 = vpop.f32.mrf.mxu1 }
 0x127   : > { %606 = vst [vmem:[%s1266_s29] sm:$0xff] %v794_v42  ;;  %614 = vst [vmem:[%s1266_s29 + $0x40] sm:$0xff] %v802_v43  ;;  %v438_v48 = vadd.f32 %v437_v44, %v1259_v31  ;;  %v478_v49 = vadd.f32 %v477_v45, %v1259_v31 }
 0x128   : > { %v441_v50 = vpop.f32.mrf.mxu0  ;;  %v481_v51 = vpop.f32.mrf.mxu1 }
 0x129   : > { %v795_v52 = vpack.c.bf16 %v438_v48, %v436_v46  ;;  %v803_v53 = vpack.c.bf16 %v478_v49, %v476_v47  ;;  %v442_v56 = vadd.f32 %v441_v50, %v1257_v30  ;;  %v482_v57 = vadd.f32 %v481_v51, %v1257_v30 }
 0x12a   : > { %v443_v54 = vpop.f32.mrf.mxu0  ;;  %v483_v55 = vpop.f32.mrf.mxu1 }
 0x12b   : > { %607 = vst [vmem:[%s1266_s29 + $0x8] sm:$0xff] %v795_v52  ;;  %615 = vst [vmem:[%s1266_s29 + $0x48] sm:$0xff] %v803_v53  ;;  %v444_v58 = vadd.f32 %v443_v54, %v1259_v31  ;;  %v484_v59 = vadd.f32 %v483_v55, %v1259_v31 }
 0x12c   : > { %v445_v60 = vpop.f32.mrf.mxu0  ;;  %v485_v61 = vpop.f32.mrf.mxu1 }
 0x12d   : > { %v796_v62 = vpack.c.bf16 %v444_v58, %v442_v56  ;;  %v804_v63 = vpack.c.bf16 %v484_v59, %v482_v57  ;;  %v446_v2 = vadd.f32 %v445_v60, %v1257_v30  ;;  %v486_v3 = vadd.f32 %v485_v61, %v1257_v30 }
 0x12e   : > { %v447_v0 = vpop.f32.mrf.mxu0  ;;  %v487_v1 = vpop.f32.mrf.mxu1 }
 0x12f   : > { %608 = vst [vmem:[%s1266_s29 + $0x10] sm:$0xff] %v796_v62  ;;  %616 = vst [vmem:[%s1266_s29 + $0x50] sm:$0xff] %v804_v63  ;;  %v448_v4 = vadd.f32 %v447_v0, %v1259_v31  ;;  %v488_v5 = vadd.f32 %v487_v1, %v1259_v31 }
 0x130   : > { %v451_v6 = vpop.f32.mrf.mxu0  ;;  %v491_v7 = vpop.f32.mrf.mxu1 }
 0x131   : > { %v797_v8 = vpack.c.bf16 %v448_v4, %v446_v2  ;;  %v805_v9 = vpack.c.bf16 %v488_v5, %v486_v3  ;;  %v452_v12 = vadd.f32 %v451_v6, %v1257_v30  ;;  %v492_v13 = vadd.f32 %v491_v7, %v1257_v30 }
 0x132   : > { %v453_v10 = vpop.f32.mrf.mxu0  ;;  %v493_v11 = vpop.f32.mrf.mxu1 }
 0x133   : > { %609 = vst [vmem:[%s1266_s29 + $0x18] sm:$0xff] %v797_v8  ;;  %617 = vst [vmem:[%s1266_s29 + $0x58] sm:$0xff] %v805_v9  ;;  %v454_v14 = vadd.f32 %v453_v10, %v1259_v31  ;;  %v494_v15 = vadd.f32 %v493_v11, %v1259_v31 }
 0x134   : > { %v455_v16 = vpop.f32.mrf.mxu0  ;;  %v495_v17 = vpop.f32.mrf.mxu1 }
 0x135   : > { %v798_v18 = vpack.c.bf16 %v454_v14, %v452_v12  ;;  %v806_v19 = vpack.c.bf16 %v494_v15, %v492_v13  ;;  %v456_v22 = vadd.f32 %v455_v16, %v1257_v30  ;;  %v496_v23 = vadd.f32 %v495_v17, %v1257_v30 }
 0x136   : > { %v457_v20 = vpop.f32.mrf.mxu0  ;;  %v497_v21 = vpop.f32.mrf.mxu1 }
 0x137   : > { %610 = vst [vmem:[%s1266_s29 + $0x20] sm:$0xff] %v798_v18  ;;  %618 = vst [vmem:[%s1266_s29 + $0x60] sm:$0xff] %v806_v19  ;;  %v458_v24 = vadd.f32 %v457_v20, %v1259_v31  ;;  %v498_v25 = vadd.f32 %v497_v21, %v1259_v31 }
 0x138   : > { %v461_v26 = vpop.f32.mrf.mxu0  ;;  %v501_v27 = vpop.f32.mrf.mxu1 }
 0x139   : > { %v799_v28 = vpack.c.bf16 %v458_v24, %v456_v22  ;;  %v807_v29 = vpack.c.bf16 %v498_v25, %v496_v23  ;;  %v462_v34 = vadd.f32 %v461_v26, %v1257_v30  ;;  %v502_v35 = vadd.f32 %v501_v27, %v1257_v30 }
 0x13a   : > { %v463_v32 = vpop.f32.mrf.mxu0  ;;  %v503_v33 = vpop.f32.mrf.mxu1 }
 0x13b   : > { %611 = vst [vmem:[%s1266_s29 + $0x28] sm:$0xff] %v799_v28  ;;  %619 = vst [vmem:[%s1266_s29 + $0x68] sm:$0xff] %v807_v29  ;;  %v464_v36 = vadd.f32 %v463_v32, %v1259_v31  ;;  %v504_v37 = vadd.f32 %v503_v33, %v1259_v31 }
 0x13c   : > { %v465_v38 = vpop.f32.mrf.mxu0  ;;  %v505_v39 = vpop.f32.mrf.mxu1 }
 0x13d   : > { %v800_v40 = vpack.c.bf16 %v464_v36, %v462_v34  ;;  %v808_v41 = vpack.c.bf16 %v504_v37, %v502_v35  ;;  %v466_v44 = vadd.f32 %v465_v38, %v1257_v30  ;;  %v506_v45 = vadd.f32 %v505_v39, %v1257_v30 }
 0x13e   : > { %v467_v42 = vpop.f32.mrf.mxu0  ;;  %v507_v43 = vpop.f32.mrf.mxu1 }
 0x13f   : > { %612 = vst [vmem:[%s1266_s29 + $0x30] sm:$0xff] %v800_v40  ;;  %620 = vst [vmem:[%s1266_s29 + $0x70] sm:$0xff] %v808_v41  ;;  %v468_v46 = vadd.f32 %v467_v42, %v1259_v31  ;;  %v508_v47 = vadd.f32 %v507_v43, %v1259_v31 }
 0x141   : > { %v801_v48 = vpack.c.bf16 %v468_v46, %v466_v44  ;;  %v809_v49 = vpack.c.bf16 %v508_v47, %v506_v45 }
 0x143   : > { %613 = vst [vmem:[%s1266_s29 + $0x38] sm:$0xff] %v801_v48  ;;  %621 = vst [vmem:[%s1266_s29 + $0x78] sm:$0xff] %v809_v49 }
 0x144   : > { %1006 = shalt.err (!%p1003_p5)
}
 0x145   : > { %s1007_s26 = scalar_lea.hbm %s1315_s7, 2048  ;;  %s1011_s20 = scalar_lea.hbm %s1370_s3, 4096 }
 0x146   : > { %p1008_p7 = scmp.ne.s32.totalorder %s1315_s7, %s1007_s26  ;;  %p1012_p9 = scmp.lt.s32.totalorder %s1315_s7, %s1370_s3 }
 0x147   : > { %p1013_p11 = scmp.lt.s32.totalorder %s1011_s20, %s1007_s26 }
 0x148   : > { %p1009_p6 = pnand %p1008_p7, %p1196_p13 }
 0x149   : > { %p1014_p12 = por %p1013_p11, %p1012_p9 }
 0x14a   : > { %p1010_p4 = pneg %p1009_p6 }
 0x14c   : > { %p1015_p1 = pnand %p1014_p12, %p1010_p4 }
 0x14e   : > { %1018 = shalt.err (!%p1015_p1)
}
 0x14f   : > { %s1087_s29 = smov 128   ;;  %s1088_s4 = smov 8  }
 0x150   : > { %833 = dma.vmem_to_hbm [thread:$0]  (%p1196_p13), %s1317_s21, 2048, %s1315_s7, %s623_s15, %s1087_s29, %s1087_s29, %s1088_s4  }
 0x151 PF: > { %s654_s5 = sand.u32 1, %s1057_s12   ;;  %p1382_p8 = scmp.ne.s32.totalorder %s1375_s23, 0 }
 0x152   : > { %p1383_p10 = scmp.ge.s32.totalorder %s1077_s17, 2  ;;  %s655_s6 = scalar_lea.sflag [#allocation4], %s654_s5 }
 0x154   : > { %p844_p0 = pnand %p1383_p10, %p1382_p8 }
 0x156   : > { %p845_p2 = pneg %p844_p0 }
 0x158   : > { %1052 = dma.done.wait (%p845_p2), %s655_s6, 2048  }
 0x159   : > { %1054 = vsyncadd (%p845_p2), %s655_s6, 4294965248  ;;  %s20_s17 = sadd.s32 1, %s1077_s17   ;;  %s1384_s12 = smov %s1061_s13 }
 0x15a   : > { %p17_p3 = scmp.ge.s32.totalorder %s20_s17, 4   ;;  %s1385_s13 = smov %s1065_s14 }
 0x15b   : > { %s1386_s14 = smov %s1205_s19  ;;  %s1387_s15 = smov %s1073_s16 }
 0x15c   : > { %s1388_s16 = smov %s1390_s28  ;;  %19 = sbr.rel (!%p17_p3) target bundleno = 7 (0x7), region = 81 }
 0x161   :  { %660 = vsyncpa [#allocation3], 1 }
 0x162   :  { %662 = vsyncpa [#allocation3 + $0x1], 1 }
 0x163   :  { %663 = vsyncpa [#allocation6], 1 }
 0x164   :  { %664 = vsyncpa [#allocation4], 1 }
 0x165   :  { %666 = vsyncpa [#allocation4 + $0x1], 1 }

</bundles_post_ra>
